<compile_context>
chip_gen: v5e
topology: v5e:2x2
jax: 0.10.0
libtpu: 0.0.40
codegen_flags: <defaults>
</compile_context>

<pallas_src>
import functools

import jax
import jax.numpy as jnp
import numpy as np
from jax.experimental import pallas as pl
from jax.experimental.pallas import tpu as pltpu


def _round_up(x, m):
    return ((x + m - 1) // m) * m


# ----------------------------- Pallas kernel -------------------------------


def _resnet_block_flat_kernel(
    x_ref,            # (TB, Cin_p)  fp32, batch-blocked
    temb_ref,         # (TB, T_p)    fp32, batch-blocked
    cin_vecs_ref,     # (8, Cin_p)   fp32: row0=norm1_g, row1=norm1_b
    cout_vecs_ref,    # (8, Cout_p)  fp32: row0=conv1_b+temb_b, row1=shortcut_b,
                      #                    row2=norm2_g, row3=norm2_b, row4=conv2_b
    w1t_ref,          # (Cin_p+T_p, Cout_p) bf16: [conv1_w^T ; temb_w^T] stacked on K
    ws_ref,           # (Cin_p, Cout_p)     bf16: shortcut_w^T
    w2_ref,           # (Cout_p, Cout_p)    bf16: conv2_w^T
    gmat_in_ref,      # (Cin_p, Gin)   fp32 one-hot channel->group
    gmat_in_t_ref,    # (Gin, Cin_p)   fp32 (pre-transposed on host)
    gmat_out_ref,     # (Cout_p, Gout) fp32
    gmat_out_t_ref,   # (Gout, Cout_p) fp32
    o_ref,            # (TB, Cout_p)  fp32
    *,
    eps: float,
    gs_in: int,
    gs_out: int,
    tb: int,
):
    f32 = jnp.float32
    bf16 = jnp.bfloat16

    x = x_ref[...]                                   # (TB, Cin_p) fp32
    cin_vecs = cin_vecs_ref[...]
    cout_vecs = cout_vecs_ref[...]

    # ---- GroupNorm 1 (H=W=1 -> per-group channel reduction), fp32 stats ----
    # sum and sum-of-squares fused into one MXU matmul by stacking rows.
    stats = jnp.dot(jnp.concatenate([x, x * x], axis=0), gmat_in_ref[...],
                    preferred_element_type=f32)      # (2*TB, Gin)
    mean_g = stats[:tb] * (1.0 / gs_in)
    var_g = jnp.maximum(stats[tb:] * (1.0 / gs_in) - mean_g * mean_g, 0.0)
    inv_g = jax.lax.rsqrt(var_g + eps)
    # scatter mean / inv-std back to channels with one stacked matmul (no in-kernel .T)
    stats_c = jnp.dot(jnp.concatenate([mean_g, inv_g], axis=0), gmat_in_t_ref[...],
                      preferred_element_type=f32)    # (2*TB, Cin_p)
    h = (x - stats_c[:tb]) * stats_c[tb:] * cin_vecs[0:1, :] + cin_vecs[1:2, :]

    # ---- SiLU (fp32) + fused conv1 + time_emb_proj (bf16 matmul, fp32 acc) ----
    h = h * jax.nn.sigmoid(h)
    t = temb_ref[...]
    t = t * jax.nn.sigmoid(t)
    lhs = jnp.concatenate([h.astype(bf16), t.astype(bf16)], axis=1)  # (TB, Cin_p+T_p)
    h = jnp.dot(lhs, w1t_ref[...], preferred_element_type=f32) + cout_vecs[0:1, :]

    # ---- GroupNorm 2 (fp32 stats) ----
    stats2 = jnp.dot(jnp.concatenate([h, h * h], axis=0), gmat_out_ref[...],
                     preferred_element_type=f32)     # (2*TB, Gout)
    mean_g2 = stats2[:tb] * (1.0 / gs_out)
    var_g2 = jnp.maximum(stats2[tb:] * (1.0 / gs_out) - mean_g2 * mean_g2, 0.0)
    inv_g2 = jax.lax.rsqrt(var_g2 + eps)
    stats_c2 = jnp.dot(jnp.concatenate([mean_g2, inv_g2], axis=0), gmat_out_t_ref[...],
                       preferred_element_type=f32)   # (2*TB, Cout_p)
    h = (h - stats_c2[:tb]) * stats_c2[tb:] * cout_vecs[2:3, :] + cout_vecs[3:4, :]

    # ---- SiLU + dropout(identity, eval) + conv2 (bf16 matmul) ----
    # TODO(synk): dropout is identity here (eval mode / p=0.0); training-mode dropout
    # would need pltpu.prng_seed + pltpu.prng_random_bits.
    h = h * jax.nn.sigmoid(h)
    h = (jnp.dot(h.astype(bf16), w2_ref[...], preferred_element_type=f32)
         + cout_vecs[4:5, :])

    # ---- shortcut 1x1 conv (bf16 matmul) ----
    sc = (jnp.dot(x.astype(bf16), ws_ref[...], preferred_element_type=f32)
          + cout_vecs[1:2, :])

    o_ref[...] = (sc + h).astype(o_ref.dtype)


# -------------------- one-time parameter preparation ------------------------


def prepare_resnet_block_flat_params(params, *, groups, groups_out, temb_channels):
    """Hoists transposes / padding / packing out of the per-call path."""
    cout, cin = params["conv1_w"].shape
    cin_p = _round_up(cin, 128)
    cout_p = _round_up(cout, 128)
    t_p = _round_up(temb_channels, 128)

    def pad2(a, shape):
        return jnp.zeros(shape, jnp.float32).at[: a.shape[0], : a.shape[1]].set(
            a.astype(jnp.float32))

    def pad_row(v, n):
        return jnp.zeros((n,), jnp.float32).at[: v.shape[0]].set(v.astype(jnp.float32))

    # bf16 resident weights, pre-transposed + zero-padded to lane-dense shapes.
    w1_t = pad2(params["conv1_w"].T, (cin_p, cout_p))
    wt_t = pad2(params["temb_w"].T, (t_p, cout_p))
    w1t = jnp.concatenate([w1_t, wt_t], axis=0).astype(jnp.bfloat16)  # (Cin_p+T_p, Cout_p)
    ws = pad2(params["shortcut_w"].T, (cin_p, cout_p)).astype(jnp.bfloat16)
    w2 = pad2(params["conv2_w"].T, (cout_p, cout_p)).astype(jnp.bfloat16)

    # pack per-channel vectors: 2 DMAs instead of 8.
    cin_vecs = jnp.zeros((8, cin_p), jnp.float32)
    cin_vecs = cin_vecs.at[0].set(pad_row(params["norm1_g"], cin_p))
    cin_vecs = cin_vecs.at[1].set(pad_row(params["norm1_b"], cin_p))

    cout_vecs = jnp.zeros((8, cout_p), jnp.float32)
    cout_vecs = cout_vecs.at[0].set(pad_row(params["conv1_b"] + params["temb_b"], cout_p))
    cout_vecs = cout_vecs.at[1].set(pad_row(params["shortcut_b"], cout_p))
    cout_vecs = cout_vecs.at[2].set(pad_row(params["norm2_g"], cout_p))
    cout_vecs = cout_vecs.at[3].set(pad_row(params["norm2_b"], cout_p))
    cout_vecs = cout_vecs.at[4].set(pad_row(params["conv2_b"], cout_p))

    gs_in = cin // groups
    gs_out = cout // groups_out
    ch_in = jnp.arange(cin_p)
    gmat_in = (((ch_in[:, None] // gs_in) == jnp.arange(groups)[None, :])
               & (ch_in[:, None] < cin)).astype(jnp.float32)          # (Cin_p, Gin)
    ch_out = jnp.arange(cout_p)
    gmat_out = (((ch_out[:, None] // gs_out) == jnp.arange(groups_out)[None, :])
                & (ch_out[:, None] < cout)).astype(jnp.float32)       # (Cout_p, Gout)

    return dict(
        w1t=w1t, ws=ws, w2=w2,
        cin_vecs=cin_vecs, cout_vecs=cout_vecs,
        gmat_in=gmat_in, gmat_in_t=jnp.asarray(gmat_in.T),
        gmat_out=gmat_out, gmat_out_t=jnp.asarray(gmat_out.T),
        cin=cin, cout=cout, cin_p=cin_p, cout_p=cout_p, t_p=t_p,
        gs_in=gs_in, gs_out=gs_out,
    )


# ----------------------------- forward wrapper -------------------------------


def resnet_block_flat_forward(x_flat, temb, prepped, *, eps=1e-6, tb=None):
    """x_flat: (B, Cin) ; temb: (B, temb_channels). Returns (B, Cout) fp32."""
    B, cin = x_flat.shape
    cin_p, cout_p, t_p = prepped["cin_p"], prepped["cout_p"], prepped["t_p"]
    cout = prepped["cout"]

    # batch tile: multiple of 8 sublanes; cap at 128 (keeps VMEM footprint well under
    # the 64 MiB physical VMEM of v7x even for 1280-wide diffusion blocks).
    if tb is None:
        tb = min(128, _round_up(max(B, 1), 8))
    b_pad = _round_up(B, tb)
    nb = b_pad // tb

    # per-call work: only zero-padding of the activations to lane/sublane-dense shapes.
    x_p = jnp.zeros((b_pad, cin_p), jnp.float32).at[:B, :cin].set(
        x_flat.astype(jnp.float32))
    t_p_in = jnp.zeros((b_pad, t_p), jnp.float32).at[:B, : temb.shape[1]].set(
        temb.astype(jnp.float32))

    weights = (prepped["cin_vecs"], prepped["cout_vecs"],
               prepped["w1t"], prepped["ws"], prepped["w2"],
               prepped["gmat_in"], prepped["gmat_in_t"],
               prepped["gmat_out"], prepped["gmat_out_t"])

    def full_spec(arr):  # resident in VMEM across all batch tiles
        return pl.BlockSpec(arr.shape, lambda i: (0, 0))

    kernel = functools.partial(
        _resnet_block_flat_kernel,
        eps=eps, gs_in=prepped["gs_in"], gs_out=prepped["gs_out"], tb=tb)

    out = pl.pallas_call(
        kernel,
        out_shape=jax.ShapeDtypeStruct((b_pad, cout_p), jnp.float32),
        grid_spec=pltpu.PrefetchScalarGridSpec(
            num_scalar_prefetch=0,
            grid=(nb,),
            in_specs=[
                pl.BlockSpec((tb, cin_p), lambda i: (i, 0)),
                pl.BlockSpec((tb, t_p), lambda i: (i, 0)),
            ] + [full_spec(w) for w in weights],
            out_specs=pl.BlockSpec((tb, cout_p), lambda i: (i, 0)),
        ),
        compiler_params=pltpu.CompilerParams(
            dimension_semantics=("parallel",),          # megacore sharding
            vmem_limit_bytes=48 * 1024 * 1024,          # <= 64 MiB physical on v7x
        ),
    )(x_p, t_p_in, *weights)

    return out[:B, :cout]


# pure-JAX fp32 reference (mirrors the PyTorch forward exactly)
def _reference(x_flat, temb, params, *, groups, groups_out, eps=1e-6):
    def gn(h, ngroups, gamma, beta):
        B, C = h.shape
        hg = h.reshape(B, ngroups, C // ngroups)
        mean = hg.mean(-1, keepdims=True)
        var = hg.var(-1, keepdims=True)  # biased, as torch GroupNorm
        hg = (hg - mean) / jnp.sqrt(var + eps)
        return hg.reshape(B, C) * gamma + beta

    silu = lambda v: v * jax.nn.sigmoid(v)
    x = x_flat
    h = gn(x, groups, params["norm1_g"], params["norm1_b"])
    h = silu(h)
    h = h @ params["conv1_w"].T + params["conv1_b"]
    h = h + (silu(temb) @ params["temb_w"].T + params["temb_b"])
    h = gn(h, groups_out, params["norm2_g"], params["norm2_b"])
    h = silu(h)
    h = h @ params["conv2_w"].T + params["conv2_b"]
    sc = x @ params["shortcut_w"].T + params["shortcut_b"]
    return sc + h


# ----------------------------- main -----------------------------------------

if __name__ == "__main__":
    # module configuration (small, consistent with ResnetBlockFlat defaults)
    in_channels = 8
    out_channels = 16
    second_dim = 4
    groups = 8
    groups_out = 8
    temb_channels = 32
    eps = 1e-6

    cin = in_channels * second_dim * 1      # in_channels_prod  = 32
    cout = out_channels * second_dim * 1    # out_channels_prod = 64
    batch = 2

    key = jax.random.PRNGKey(0)
    ks = jax.random.split(key, 12)
    scale = 0.1
    params = {
        "norm1_g": jnp.ones((cin,), jnp.float32),
        "norm1_b": jnp.zeros((cin,), jnp.float32),
        "conv1_w": scale * jax.random.normal(ks[0], (cout, cin), jnp.float32),
        "conv1_b": scale * jax.random.normal(ks[1], (cout,), jnp.float32),
        "temb_w": scale * jax.random.normal(ks[2], (cout, temb_channels), jnp.float32),
        "temb_b": scale * jax.random.normal(ks[3], (cout,), jnp.float32),
        "norm2_g": jnp.ones((cout,), jnp.float32)
                   + scale * jax.random.normal(ks[4], (cout,), jnp.float32),
        "norm2_b": scale * jax.random.normal(ks[5], (cout,), jnp.float32),
        "conv2_w": scale * jax.random.normal(ks[6], (cout, cout), jnp.float32),
        "conv2_b": scale * jax.random.normal(ks[7], (cout,), jnp.float32),
        "shortcut_w": scale * jax.random.normal(ks[8], (cout, cin), jnp.float32),
        "shortcut_b": scale * jax.random.normal(ks[9], (cout,), jnp.float32),
    }

    # input: (batch, in_channels, second_dim, 1)  (trailing multidim channels)
    x = jax.random.normal(ks[10], (batch, in_channels, second_dim, 1), jnp.float32)
    temb = jax.random.normal(ks[11], (batch, temb_channels), jnp.float32)

    # flatten exactly as the PyTorch forward does: (..., Cin_prod, 1, 1) -> (B, Cin)
    x_flat = x.reshape(batch, cin)

    prepped = prepare_resnet_block_flat_params(
        params, groups=groups, groups_out=groups_out, temb_channels=temb_channels)

    out_flat = resnet_block_flat_forward(x_flat, temb, prepped, eps=eps)
    out_flat = jax.block_until_ready(out_flat)

    # reshape back to (*batch_dims, *out_channels_multidim)
    out = out_flat.reshape(batch, out_channels, second_dim, 1)

    ref = _reference(x_flat, temb, params, groups=groups, groups_out=groups_out, eps=eps)
    # dense matmuls run in bf16 (fp32 accumulation) on the MXU -> relaxed tolerance
    np.testing.assert_allclose(np.asarray(out_flat), np.asarray(ref),
                               rtol=5e-2, atol=5e-2)

    print("KERNEL_OK")
</pallas_src>

<mosaic_0001>
module attributes {stable_mosaic.version = 11 : i64} {
  func.func @_resnet_block_flat_kernel(%arg0: i32, %arg1: memref<8x128xf32, #tpu.memory_space<vmem>>, %arg2: memref<8x128xf32, #tpu.memory_space<vmem>>, %arg3: memref<8x128xf32, #tpu.memory_space<vmem>>, %arg4: memref<8x128xf32, #tpu.memory_space<vmem>>, %arg5: memref<256x128xbf16, #tpu.memory_space<vmem>>, %arg6: memref<128x128xbf16, #tpu.memory_space<vmem>>, %arg7: memref<128x128xbf16, #tpu.memory_space<vmem>>, %arg8: memref<128x8xf32, #tpu.memory_space<vmem>>, %arg9: memref<8x128xf32, #tpu.memory_space<vmem>>, %arg10: memref<128x8xf32, #tpu.memory_space<vmem>>, %arg11: memref<8x128xf32, #tpu.memory_space<vmem>>, %arg12: memref<8x128xf32, #tpu.memory_space<vmem>>) attributes {dimension_semantics = [#tpu.dimension_semantics<parallel>], iteration_bounds = array<i64: 1>, scalar_prefetch = 0 : i64, scratch_operands = 0 : i64, tpu.core_type = #tpu.core_type<tc>, window_params = [{transform_indices = @transform_0, window_bounds = array<i64: 8, 128>}, {transform_indices = @transform_1, window_bounds = array<i64: 8, 128>}, {pipeline_mode = #tpu.pipeline_mode<synchronous>, transform_indices = @transform_2, window_bounds = array<i64: 8, 128>}, {pipeline_mode = #tpu.pipeline_mode<synchronous>, transform_indices = @transform_3, window_bounds = array<i64: 8, 128>}, {pipeline_mode = #tpu.pipeline_mode<synchronous>, transform_indices = @transform_4, window_bounds = array<i64: 256, 128>}, {pipeline_mode = #tpu.pipeline_mode<synchronous>, transform_indices = @transform_5, window_bounds = array<i64: 128, 128>}, {pipeline_mode = #tpu.pipeline_mode<synchronous>, transform_indices = @transform_6, window_bounds = array<i64: 128, 128>}, {pipeline_mode = #tpu.pipeline_mode<synchronous>, transform_indices = @transform_7, window_bounds = array<i64: 128, 8>}, {pipeline_mode = #tpu.pipeline_mode<synchronous>, transform_indices = @transform_8, window_bounds = array<i64: 8, 128>}, {pipeline_mode = #tpu.pipeline_mode<synchronous>, transform_indices = @transform_9, window_bounds = array<i64: 128, 8>}, {pipeline_mode = #tpu.pipeline_mode<synchronous>, transform_indices = @transform_10, window_bounds = array<i64: 8, 128>}, {transform_indices = @transform_11, window_bounds = array<i64: 8, 128>}]} {
    %c0 = arith.constant 0 : index
    %c0_0 = arith.constant 0 : index
    %0 = vector.load %arg1[%c0, %c0_0] : memref<8x128xf32, #tpu.memory_space<vmem>>, vector<8x128xf32>
    %c0_1 = arith.constant 0 : index
    %c0_2 = arith.constant 0 : index
    %1 = vector.load %arg3[%c0_1, %c0_2] : memref<8x128xf32, #tpu.memory_space<vmem>>, vector<8x128xf32>
    %c0_3 = arith.constant 0 : index
    %c0_4 = arith.constant 0 : index
    %2 = vector.load %arg4[%c0_3, %c0_4] : memref<8x128xf32, #tpu.memory_space<vmem>>, vector<8x128xf32>
    %3 = arith.mulf %0, %0 : vector<8x128xf32>
    %4 = tpu.concatenate %0, %3 in 0 : vector<8x128xf32>, vector<8x128xf32> -> vector<16x128xf32>
    %c0_5 = arith.constant 0 : index
    %c0_6 = arith.constant 0 : index
    %5 = vector.load %arg8[%c0_5, %c0_6] : memref<128x8xf32, #tpu.memory_space<vmem>>, vector<128x8xf32>
    %cst = arith.constant dense<0.000000e+00> : vector<16x8xf32>
    %6 = tpu.matmul %4, %5, %cst {dimension_numbers = #tpu.dot_dimension_numbers<[1], [0], [0], [1], [0, 0, 1, 1], [], []>} : vector<16x128xf32>, vector<128x8xf32>, vector<16x8xf32> -> vector<16x8xf32>
    %7 = vector.extract_strided_slice %6 {offsets = [0, 0], sizes = [8, 8], strides = [1, 1]} : vector<16x8xf32> to vector<8x8xf32>
    %cst_7 = arith.constant 2.500000e-01 : f32
    %8 = vector.broadcast %cst_7 : f32 to vector<8x8xf32>
    %9 = arith.mulf %7, %8 : vector<8x8xf32>
    %10 = vector.extract_strided_slice %6 {offsets = [8, 0], sizes = [8, 8], strides = [1, 1]} : vector<16x8xf32> to vector<8x8xf32>
    %cst_8 = arith.constant 2.500000e-01 : f32
    %11 = vector.broadcast %cst_8 : f32 to vector<8x8xf32>
    %12 = arith.mulf %10, %11 : vector<8x8xf32>
    %13 = arith.mulf %9, %9 : vector<8x8xf32>
    %14 = arith.subf %12, %13 : vector<8x8xf32>
    %cst_9 = arith.constant 0.000000e+00 : f32
    %15 = vector.broadcast %cst_9 : f32 to vector<8x8xf32>
    %16 = arith.maximumf %14, %15 : vector<8x8xf32>
    %cst_10 = arith.constant 9.99999997E-7 : f32
    %17 = vector.broadcast %cst_10 : f32 to vector<8x8xf32>
    %18 = arith.addf %16, %17 : vector<8x8xf32>
    %19 = math.rsqrt %18 : vector<8x8xf32>
    %20 = tpu.concatenate %9, %19 in 0 : vector<8x8xf32>, vector<8x8xf32> -> vector<16x8xf32>
    %c0_11 = arith.constant 0 : index
    %c0_12 = arith.constant 0 : index
    %21 = vector.load %arg9[%c0_11, %c0_12] : memref<8x128xf32, #tpu.memory_space<vmem>>, vector<8x128xf32>
    %cst_13 = arith.constant dense<0.000000e+00> : vector<16x128xf32>
    %22 = tpu.matmul %20, %21, %cst_13 {dimension_numbers = #tpu.dot_dimension_numbers<[1], [0], [0], [1], [0, 0, 1, 1], [], []>} : vector<16x8xf32>, vector<8x128xf32>, vector<16x128xf32> -> vector<16x128xf32>
    %23 = vector.extract_strided_slice %22 {offsets = [0, 0], sizes = [8, 128], strides = [1, 1]} : vector<16x128xf32> to vector<8x128xf32>
    %24 = arith.subf %0, %23 : vector<8x128xf32>
    %25 = vector.extract_strided_slice %22 {offsets = [8, 0], sizes = [8, 128], strides = [1, 1]} : vector<16x128xf32> to vector<8x128xf32>
    %26 = arith.mulf %24, %25 : vector<8x128xf32>
    %27 = vector.extract_strided_slice %1 {offsets = [0, 0], sizes = [1, 128], strides = [1, 1]} : vector<8x128xf32> to vector<1x128xf32>
    %28 = vector.broadcast %27 : vector<1x128xf32> to vector<8x128xf32>
    %29 = arith.mulf %26, %28 : vector<8x128xf32>
    %30 = vector.extract_strided_slice %1 {offsets = [1, 0], sizes = [1, 128], strides = [1, 1]} : vector<8x128xf32> to vector<1x128xf32>
    %31 = vector.broadcast %30 : vector<1x128xf32> to vector<8x128xf32>
    %32 = arith.addf %29, %31 : vector<8x128xf32>
    %33 = arith.negf %32 : vector<8x128xf32>
    %34 = math.exp %33 : vector<8x128xf32>
    %cst_14 = arith.constant 1.000000e+00 : f32
    %35 = vector.broadcast %cst_14 : f32 to vector<8x128xf32>
    %36 = arith.addf %35, %34 : vector<8x128xf32>
    %37 = arith.divf %35, %36 : vector<8x128xf32>
    %38 = arith.mulf %32, %37 : vector<8x128xf32>
    %c0_15 = arith.constant 0 : index
    %c0_16 = arith.constant 0 : index
    %39 = vector.load %arg2[%c0_15, %c0_16] : memref<8x128xf32, #tpu.memory_space<vmem>>, vector<8x128xf32>
    %40 = arith.negf %39 : vector<8x128xf32>
    %41 = math.exp %40 : vector<8x128xf32>
    %cst_17 = arith.constant 1.000000e+00 : f32
    %42 = vector.broadcast %cst_17 : f32 to vector<8x128xf32>
    %43 = arith.addf %42, %41 : vector<8x128xf32>
    %44 = arith.divf %42, %43 : vector<8x128xf32>
    %45 = arith.mulf %39, %44 : vector<8x128xf32>
    %46 = arith.truncf %38 : vector<8x128xf32> to vector<8x128xbf16>
    %47 = arith.truncf %45 : vector<8x128xf32> to vector<8x128xbf16>
    %48 = tpu.concatenate %46, %47 in 1 : vector<8x128xbf16>, vector<8x128xbf16> -> vector<8x256xbf16>
    %c0_18 = arith.constant 0 : index
    %c0_19 = arith.constant 0 : index
    %49 = vector.load %arg5[%c0_18, %c0_19] : memref<256x128xbf16, #tpu.memory_space<vmem>>, vector<256x128xbf16>
    %cst_20 = arith.constant dense<0.000000e+00> : vector<8x128xf32>
    %50 = tpu.matmul %48, %49, %cst_20 {dimension_numbers = #tpu.dot_dimension_numbers<[1], [0], [0], [1], [0, 0, 1, 1], [], []>} : vector<8x256xbf16>, vector<256x128xbf16>, vector<8x128xf32> -> vector<8x128xf32>
    %51 = vector.extract_strided_slice %2 {offsets = [0, 0], sizes = [1, 128], strides = [1, 1]} : vector<8x128xf32> to vector<1x128xf32>
    %52 = vector.broadcast %51 : vector<1x128xf32> to vector<8x128xf32>
    %53 = arith.addf %50, %52 : vector<8x128xf32>
    %54 = arith.mulf %53, %53 : vector<8x128xf32>
    %55 = tpu.concatenate %53, %54 in 0 : vector<8x128xf32>, vector<8x128xf32> -> vector<16x128xf32>
    %c0_21 = arith.constant 0 : index
    %c0_22 = arith.constant 0 : index
    %56 = vector.load %arg10[%c0_21, %c0_22] : memref<128x8xf32, #tpu.memory_space<vmem>>, vector<128x8xf32>
    %cst_23 = arith.constant dense<0.000000e+00> : vector<16x8xf32>
    %57 = tpu.matmul %55, %56, %cst_23 {dimension_numbers = #tpu.dot_dimension_numbers<[1], [0], [0], [1], [0, 0, 1, 1], [], []>} : vector<16x128xf32>, vector<128x8xf32>, vector<16x8xf32> -> vector<16x8xf32>
    %58 = vector.extract_strided_slice %57 {offsets = [0, 0], sizes = [8, 8], strides = [1, 1]} : vector<16x8xf32> to vector<8x8xf32>
    %cst_24 = arith.constant 1.250000e-01 : f32
    %59 = vector.broadcast %cst_24 : f32 to vector<8x8xf32>
    %60 = arith.mulf %58, %59 : vector<8x8xf32>
    %61 = vector.extract_strided_slice %57 {offsets = [8, 0], sizes = [8, 8], strides = [1, 1]} : vector<16x8xf32> to vector<8x8xf32>
    %cst_25 = arith.constant 1.250000e-01 : f32
    %62 = vector.broadcast %cst_25 : f32 to vector<8x8xf32>
    %63 = arith.mulf %61, %62 : vector<8x8xf32>
    %64 = arith.mulf %60, %60 : vector<8x8xf32>
    %65 = arith.subf %63, %64 : vector<8x8xf32>
    %cst_26 = arith.constant 0.000000e+00 : f32
    %66 = vector.broadcast %cst_26 : f32 to vector<8x8xf32>
    %67 = arith.maximumf %65, %66 : vector<8x8xf32>
    %cst_27 = arith.constant 9.99999997E-7 : f32
    %68 = vector.broadcast %cst_27 : f32 to vector<8x8xf32>
    %69 = arith.addf %67, %68 : vector<8x8xf32>
    %70 = math.rsqrt %69 : vector<8x8xf32>
    %71 = tpu.concatenate %60, %70 in 0 : vector<8x8xf32>, vector<8x8xf32> -> vector<16x8xf32>
    %c0_28 = arith.constant 0 : index
    %c0_29 = arith.constant 0 : index
    %72 = vector.load %arg11[%c0_28, %c0_29] : memref<8x128xf32, #tpu.memory_space<vmem>>, vector<8x128xf32>
    %cst_30 = arith.constant dense<0.000000e+00> : vector<16x128xf32>
    %73 = tpu.matmul %71, %72, %cst_30 {dimension_numbers = #tpu.dot_dimension_numbers<[1], [0], [0], [1], [0, 0, 1, 1], [], []>} : vector<16x8xf32>, vector<8x128xf32>, vector<16x128xf32> -> vector<16x128xf32>
    %74 = vector.extract_strided_slice %73 {offsets = [0, 0], sizes = [8, 128], strides = [1, 1]} : vector<16x128xf32> to vector<8x128xf32>
    %75 = arith.subf %53, %74 : vector<8x128xf32>
    %76 = vector.extract_strided_slice %73 {offsets = [8, 0], sizes = [8, 128], strides = [1, 1]} : vector<16x128xf32> to vector<8x128xf32>
    %77 = arith.mulf %75, %76 : vector<8x128xf32>
    %78 = vector.extract_strided_slice %2 {offsets = [2, 0], sizes = [1, 128], strides = [1, 1]} : vector<8x128xf32> to vector<1x128xf32>
    %79 = vector.broadcast %78 : vector<1x128xf32> to vector<8x128xf32>
    %80 = arith.mulf %77, %79 : vector<8x128xf32>
    %81 = vector.extract_strided_slice %2 {offsets = [3, 0], sizes = [1, 128], strides = [1, 1]} : vector<8x128xf32> to vector<1x128xf32>
    %82 = vector.broadcast %81 : vector<1x128xf32> to vector<8x128xf32>
    %83 = arith.addf %80, %82 : vector<8x128xf32>
    %84 = arith.negf %83 : vector<8x128xf32>
    %85 = math.exp %84 : vector<8x128xf32>
    %cst_31 = arith.constant 1.000000e+00 : f32
    %86 = vector.broadcast %cst_31 : f32 to vector<8x128xf32>
    %87 = arith.addf %86, %85 : vector<8x128xf32>
    %88 = arith.divf %86, %87 : vector<8x128xf32>
    %89 = arith.mulf %83, %88 : vector<8x128xf32>
    %90 = arith.truncf %89 : vector<8x128xf32> to vector<8x128xbf16>
    %c0_32 = arith.constant 0 : index
    %c0_33 = arith.constant 0 : index
    %91 = vector.load %arg7[%c0_32, %c0_33] : memref<128x128xbf16, #tpu.memory_space<vmem>>, vector<128x128xbf16>
    %cst_34 = arith.constant dense<0.000000e+00> : vector<8x128xf32>
    %92 = tpu.matmul %90, %91, %cst_34 {dimension_numbers = #tpu.dot_dimension_numbers<[1], [0], [0], [1], [0, 0, 1, 1], [], []>} : vector<8x128xbf16>, vector<128x128xbf16>, vector<8x128xf32> -> vector<8x128xf32>
    %93 = vector.extract_strided_slice %2 {offsets = [4, 0], sizes = [1, 128], strides = [1, 1]} : vector<8x128xf32> to vector<1x128xf32>
    %94 = vector.broadcast %93 : vector<1x128xf32> to vector<8x128xf32>
    %95 = arith.addf %92, %94 : vector<8x128xf32>
    %96 = arith.truncf %0 : vector<8x128xf32> to vector<8x128xbf16>
    %c0_35 = arith.constant 0 : index
    %c0_36 = arith.constant 0 : index
    %97 = vector.load %arg6[%c0_35, %c0_36] : memref<128x128xbf16, #tpu.memory_space<vmem>>, vector<128x128xbf16>
    %cst_37 = arith.constant dense<0.000000e+00> : vector<8x128xf32>
    %98 = tpu.matmul %96, %97, %cst_37 {dimension_numbers = #tpu.dot_dimension_numbers<[1], [0], [0], [1], [0, 0, 1, 1], [], []>} : vector<8x128xbf16>, vector<128x128xbf16>, vector<8x128xf32> -> vector<8x128xf32>
    %99 = vector.extract_strided_slice %2 {offsets = [1, 0], sizes = [1, 128], strides = [1, 1]} : vector<8x128xf32> to vector<1x128xf32>
    %100 = vector.broadcast %99 : vector<1x128xf32> to vector<8x128xf32>
    %101 = arith.addf %98, %100 : vector<8x128xf32>
    %102 = arith.addf %101, %95 : vector<8x128xf32>
    %c0_38 = arith.constant 0 : index
    %c0_39 = arith.constant 0 : index
    %103 = vector.load %arg12[%c0_38, %c0_39] : memref<8x128xf32, #tpu.memory_space<vmem>>, vector<8x128xf32>
    tpu.vector_store %arg12[%c0_38, %c0_39], %102 {strides = array<i32>} : memref<8x128xf32, #tpu.memory_space<vmem>>, vector<8x128xf32>,
    return
  }
  func.func @transform_0(%arg0: i32) -> (i32, i32) {
    %c0_i32 = arith.constant 0 : i32
    %c0_i32_0 = arith.constant 0 : i32
    return %arg0, %c0_i32 : i32, i32
  }
  func.func @transform_1(%arg0: i32) -> (i32, i32) {
    %c0_i32 = arith.constant 0 : i32
    %c0_i32_0 = arith.constant 0 : i32
    return %arg0, %c0_i32 : i32, i32
  }
  func.func @transform_2(%arg0: i32) -> (i32, i32) {
    %c0_i32 = arith.constant 0 : i32
    %c0_i32_0 = arith.constant 0 : i32
    %c0_i32_1 = arith.constant 0 : i32
    return %c0_i32, %c0_i32_0 : i32, i32
  }
  func.func @transform_3(%arg0: i32) -> (i32, i32) {
    %c0_i32 = arith.constant 0 : i32
    %c0_i32_0 = arith.constant 0 : i32
    %c0_i32_1 = arith.constant 0 : i32
    return %c0_i32, %c0_i32_0 : i32, i32
  }
  func.func @transform_4(%arg0: i32) -> (i32, i32) {
    %c0_i32 = arith.constant 0 : i32
    %c0_i32_0 = arith.constant 0 : i32
    %c0_i32_1 = arith.constant 0 : i32
    return %c0_i32, %c0_i32_0 : i32, i32
  }
  func.func @transform_5(%arg0: i32) -> (i32, i32) {
    %c0_i32 = arith.constant 0 : i32
    %c0_i32_0 = arith.constant 0 : i32
    %c0_i32_1 = arith.constant 0 : i32
    return %c0_i32, %c0_i32_0 : i32, i32
  }
  func.func @transform_6(%arg0: i32) -> (i32, i32) {
    %c0_i32 = arith.constant 0 : i32
    %c0_i32_0 = arith.constant 0 : i32
    %c0_i32_1 = arith.constant 0 : i32
    return %c0_i32, %c0_i32_0 : i32, i32
  }
  func.func @transform_7(%arg0: i32) -> (i32, i32) {
    %c0_i32 = arith.constant 0 : i32
    %c0_i32_0 = arith.constant 0 : i32
    %c0_i32_1 = arith.constant 0 : i32
    return %c0_i32, %c0_i32_0 : i32, i32
  }
  func.func @transform_8(%arg0: i32) -> (i32, i32) {
    %c0_i32 = arith.constant 0 : i32
    %c0_i32_0 = arith.constant 0 : i32
    %c0_i32_1 = arith.constant 0 : i32
    return %c0_i32, %c0_i32_0 : i32, i32
  }
  func.func @transform_9(%arg0: i32) -> (i32, i32) {
    %c0_i32 = arith.constant 0 : i32
    %c0_i32_0 = arith.constant 0 : i32
    %c0_i32_1 = arith.constant 0 : i32
    return %c0_i32, %c0_i32_0 : i32, i32
  }
  func.func @transform_10(%arg0: i32) -> (i32, i32) {
    %c0_i32 = arith.constant 0 : i32
    %c0_i32_0 = arith.constant 0 : i32
    %c0_i32_1 = arith.constant 0 : i32
    return %c0_i32, %c0_i32_0 : i32, i32
  }
  func.func @transform_11(%arg0: i32) -> (i32, i32) {
    %c0_i32 = arith.constant 0 : i32
    %c0_i32_0 = arith.constant 0 : i32
    return %arg0, %c0_i32 : i32, i32
  }
}

</mosaic_0001>

<bundles_post_ra>
// kernel: tpu_custom_call.1
= control target key start
LH: loop header
LB: loop body
LE: loop exit
PB: predicated region body
PF: predicated region fallthrough
CT: control target
= control target key end

     0   :  { %16 = vsyncpa [#allocation3], 0  ;;  %s1298_s0 = inlined_call_operand.vmem [shape: f32[8,128], index: 0, kind: input, shape index: {}]   ;;  %s1299_s1 = inlined_call_operand.hbm [shape: f32[8,128], index: 1, kind: input, shape index: {}]   ;;  %s1300_s2 = inlined_call_operand.hbm [shape: f32[8,128], index: 2, kind: input, shape index: {}]   ;;  %s1301_s3 = inlined_call_operand.hbm [shape: f32[8,128], index: 3, kind: input, shape index: {}]   ;;  %s1302_s4 = inlined_call_operand.vmem [shape: bf16[256,128], index: 4, kind: input, shape index: {}]   ;;  %s1303_s5 = inlined_call_operand.vmem [shape: bf16[128,128], index: 5, kind: input, shape index: {}]   ;;  %s1304_s6 = inlined_call_operand.vmem [shape: bf16[128,128], index: 6, kind: input, shape index: {}]   ;;  %s1305_s7 = inlined_call_operand.vmem [shape: f32[128,8], index: 7, kind: input, shape index: {}]   ;;  %s1306_s8 = inlined_call_operand.hbm [shape: f32[8,128], index: 8, kind: input, shape index: {}]   ;;  %s1307_s9 = inlined_call_operand.vmem [shape: f32[128,8], index: 9, kind: input, shape index: {}]   ;;  %s1308_s10 = inlined_call_operand.vmem [shape: f32[8,128], index: 10, kind: input, shape index: {}]   ;;  %s1309_s11 = inlined_call_operand.hbm [shape: f32[8,128], index: 11, kind: output, shape index: {}]  }
   0x1   :  { %17 = vsyncpa [#allocation6], 0 }
   0x2   :  { %18 = vsyncpa [#allocation9], 0  ;;  %s38_s19 = sshll.u32 %s1300_s2, 4  ;;  %s39_s19 = int_to_ptr.hbm [resolvable:$true] %s38_s19 }
   0x3   :  { %19 = vsyncpa [#allocation4], 0  ;;  %s995_s20 = smov [#allocation5]   ;;  %s27_s24 = sshll.u32 %s1299_s1, 4  ;;  %s28_s24 = int_to_ptr.hbm [resolvable:$true] %s27_s24 }
   0x4   :  { %s40_s21 = sshll.u32 %s995_s20, 4  ;;  %s996_s25 = smov [#allocation2]   ;;  %s41_s21 = int_to_ptr.vmem [resolvable:$true] %s40_s21 }
   0x5   :  { %43 = dma.hbm_to_vmem [thread:$0]  %s39_s19, 128, %s41_s21, [#allocation6]  }
   0x6   :  { %s29_s26 = sshll.u32 %s996_s25, 4  ;;  %s49_s29 = sshll.u32 %s1301_s3, 4  ;;  %s30_s26 = int_to_ptr.vmem [resolvable:$true] %s29_s26  ;;  %s50_s29 = int_to_ptr.hbm [resolvable:$true] %s49_s29 }
   0x7   :  { %32 = dma.hbm_to_vmem [thread:$0]  %s28_s24, 128, %s30_s26, [#allocation3]  }
   0x8   :  { %s68_s12 = sshll.u32 %s1306_s8, 4  ;;  %s997_s13 = smov [#allocation7]   ;;  %s69_s12 = int_to_ptr.hbm [resolvable:$true] %s68_s12 }
   0x9   :  { %s51_s14 = sshll.u32 %s997_s13, 4  ;;  %s998_s1 = smov [#allocation8]   ;;  %s52_s14 = int_to_ptr.vmem [resolvable:$true] %s51_s14 }
   0xa   :  { %54 = dma.hbm_to_vmem [thread:$0]  %s50_s29, 128, %s52_s14, [#allocation6]  }
   0xb   :  { %s70_s15 = sshll.u32 %s998_s1, 4  ;;  %s71_s15 = int_to_ptr.vmem [resolvable:$true] %s70_s15 }
   0xc   :  { %73 = dma.hbm_to_vmem [thread:$0]  %s69_s12, 128, %s71_s15, [#allocation9]  }
   0xd   :  { %987 = dma.done.wait [#allocation3], 128  }
   0xe   :  { %988 = vsyncadd [#allocation3], 4294967168 }
   0xf   :  { %989 = dma.done.wait [#allocation6], 256  }
  0x10   :  { %990 = vsyncadd [#allocation6], 4294967040 }
  0x11   :  { %991 = dma.done.wait [#allocation9], 128  }
  0x12   :  { %992 = vsyncadd [#allocation9], 4294967168  ;;  %v113_v0 = vld [vmem:[%s1305_s7 + $0x78] sm:$0xff]  ;;  %v112_v1 = vld [vmem:[%s1305_s7 + $0x70] sm:$0xff]  ;;  %vm154_vm0 = vcmask 64512   ;;  %s667_s18 = sshll.u32 %s1309_s11, 4  ;;  %s668_s18 = int_to_ptr.hbm [resolvable:$true] %s667_s18 }
  0x13   :  { %114 = vmatpush.msra.mxu0 %v113_v0  ;;  %v111_v2 = vld [vmem:[%s1305_s7 + $0x68] sm:$0xff]  ;;  %v110_v3 = vld [vmem:[%s1305_s7 + $0x60] sm:$0xff]  ;;  %v109_v4 = vld [vmem:[%s1305_s7 + $0x58] sm:$0xff] }
  0x14   :  { %v108_v5 = vld [vmem:[%s1305_s7 + $0x50] sm:$0xff]  ;;  %v107_v6 = vld [vmem:[%s1305_s7 + $0x48] sm:$0xff]  ;;  %v106_v7 = vld [vmem:[%s1305_s7 + $0x40] sm:$0xff] }
  0x15   :  { %115 = vmatpush.msra.mxu0 %v112_v1  ;;  %v105_v8 = vld [vmem:[%s1305_s7 + $0x38] sm:$0xff]  ;;  %v104_v9 = vld [vmem:[%s1305_s7 + $0x30] sm:$0xff]  ;;  %v103_v10 = vld [vmem:[%s1305_s7 + $0x28] sm:$0xff] }
  0x16   :  { %v102_v11 = vld [vmem:[%s1305_s7 + $0x20] sm:$0xff]  ;;  %v101_v12 = vld [vmem:[%s1305_s7 + $0x18] sm:$0xff]  ;;  %v100_v13 = vld [vmem:[%s1305_s7 + $0x10] sm:$0xff] }
  0x17   :  { %116 = vmatpush.msra.mxu0 %v111_v2  ;;  %v99_v14 = vld [vmem:[%s1305_s7 + $0x8] sm:$0xff]  ;;  %v98_v15 = vld [vmem:[%s1305_s7] sm:$0xff]  ;;  %v153_v18 = vld [vmem:[#allocation8] sm:$0xff] }
  0x18   :  { %v1123_v16 = vld [vmem:[%s1298_s0] sm:$0xff]  ;;  %176 = vmatpush.msra.mxu1 %v153_v18  ;;  %v829_v34 = vld [vmem:[%s1302_s4 + $0x78] sm:$0xff]  ;;  %v828_v37 = vld [vmem:[%s1302_s4 + $0x70] sm:$0xff] }
  0x19   :  { %117 = vmatpush.msra.mxu0 %v110_v3  ;;  %v97_v17 = vmul.f32 %v1123_v16, %v1123_v16  ;;  %v210_v35 = vld [vmem:[#allocation2] sm:$0xff]  ;;  %375 = vmatpush.bf16.msra.mxu3 %v829_v34  ;;  %v821_v38 = vld [vmem:[%s1302_s4 + $0x38] sm:$0xff]  ;;  %v820_v39 = vld [vmem:[%s1302_s4 + $0x30] sm:$0xff] }
  0x1a   :  { %v682_v36 = vmul.f32 -1.442695, %v210_v35  ;;  %362 = vmatpush.bf16.msra.mxu2 %v821_v38  ;;  %v827_v40 = vld [vmem:[%s1302_s4 + $0x68] sm:$0xff]  ;;  %v826_v43 = vld [vmem:[%s1302_s4 + $0x60] sm:$0xff]  ;;  %v825_v46 = vld [vmem:[%s1302_s4 + $0x58] sm:$0xff] }
  0x1b   :  { %118 = vmatpush.msra.mxu0 %v109_v4  ;;  %v819_v42 = vld [vmem:[%s1302_s4 + $0x28] sm:$0xff]  ;;  %v818_v45 = vld [vmem:[%s1302_s4 + $0x20] sm:$0xff]  ;;  %v817_v47 = vld [vmem:[%s1302_s4 + $0x18] sm:$0xff] }
  0x1c   :  { %v824_v49 = vld [vmem:[%s1302_s4 + $0x50] sm:$0xff]  ;;  %v823_v55 = vld [vmem:[%s1302_s4 + $0x48] sm:$0xff]  ;;  %v822_v61 = vld [vmem:[%s1302_s4 + $0x40] sm:$0xff] }
  0x1d   :  { %119 = vmatpush.msra.mxu0 %v108_v5  ;;  %376 = vmatpush.bf16.msra.mxu3 %v828_v37  ;;  %v816_v52 = vld [vmem:[%s1302_s4 + $0x10] sm:$0xff]  ;;  %v815_v59 = vld [vmem:[%s1302_s4 + $0x8] sm:$0xff]  ;;  %v814_v2 = vld [vmem:[%s1302_s4] sm:$0xff] }
  0x1e   :  { %363 = vmatpush.bf16.msra.mxu2 %v820_v39  ;;  %v95_v63 = vld [vmem:[#allocation5] sm:$0xff]  ;;  %v393_v38 = vld [vmem:[%s1307_s9 + $0x20] sm:$0xff]  ;;  %v392_v39 = vld [vmem:[%s1307_s9 + $0x18] sm:$0xff] }
  0x1f   :  { %120 = vmatpush.msra.mxu0 %v107_v6  ;;  %v186_v4 = vperm.slane %v95_v63, 0  ;;  %v394_v37 = vld [vmem:[%s1307_s9 + $0x28] sm:$0xff] }
  0x21   :  { %121 = vmatpush.msra.mxu0 %v106_v7  ;;  %377 = vmatpush.bf16.msra.mxu3 %v827_v40 }
  0x22   :  { %364 = vmatpush.bf16.msra.mxu2 %v819_v42  ;;  %v390_v42 = vld [vmem:[%s1307_s9 + $0x8] sm:$0xff] }
  0x23   :  { %122 = vmatpush.msra.mxu0 %v105_v8  ;;  %v188_v8 = vperm.slane %v95_v63, 1 }
  0x25   :  { %123 = vmatpush.msra.mxu0 %v104_v9  ;;  %378 = vmatpush.bf16.msra.mxu3 %v826_v43 }
  0x26   :  { %365 = vmatpush.bf16.msra.mxu2 %v818_v45  ;;  %v1227_v45 = vld [vmem:[#allocation7] sm:$0xff] }
  0x27   :  { %124 = vmatpush.msra.mxu0 %v103_v10 }
  0x29   :  { %125 = vmatpush.msra.mxu0 %v102_v11  ;;  %379 = vmatpush.bf16.msra.mxu3 %v825_v46  ;;  %v265_v46 = vperm.slane %v1227_v45, 0 }
  0x2a   :  { %366 = vmatpush.bf16.msra.mxu2 %v817_v47 }
  0x2b   :  { %126 = vmatpush.msra.mxu0 %v101_v12  ;;  %v404_v12 = vld [vmem:[%s1307_s9 + $0x78] sm:$0xff] }
  0x2c   :  { %405 = vmatpush.msrb.mxu1 %v404_v12  ;;  %v834_v12 = vld [vmem:[%s1304_s6 + $0x20] sm:$0xff] }
  0x2d   :  { %127 = vmatpush.msra.mxu0 %v100_v13  ;;  %380 = vmatpush.bf16.msra.mxu3 %v824_v49  ;;  %v403_v13 = vld [vmem:[%s1307_s9 + $0x70] sm:$0xff] }
  0x2e   :  { %367 = vmatpush.bf16.msra.mxu2 %v816_v52  ;;  %406 = vmatpush.msrb.mxu1 %v403_v13  ;;  %v444_v52 = vld [vmem:[%s1308_s10] sm:$0xff]  ;;  %v840_v13 = vld [vmem:[%s1303_s5 + $0x10] sm:$0xff] }
  0x2f   :  { %128 = vmatpush.msra.mxu0 %v99_v14  ;;  %v402_v14 = vld [vmem:[%s1307_s9 + $0x68] sm:$0xff] }
  0x30   :  { %407 = vmatpush.msrb.mxu1 %v402_v14  ;;  %v833_v14 = vld [vmem:[%s1304_s6 + $0x18] sm:$0xff] }
  0x31   :  { %129 = vmatpush.msra.mxu0 %v98_v15  ;;  %381 = vmatpush.bf16.msra.mxu3 %v823_v55  ;;  %v401_v15 = vld [vmem:[%s1307_s9 + $0x60] sm:$0xff] }
  0x32   :  { %130 = vmatmul.f32.vlgmr.msra.gmra.mxu0 %v1123_v16  ;;  %368 = vmatpush.bf16.msra.mxu2 %v815_v59 }
  0x33   :  { %408 = vmatpush.msrb.mxu1 %v401_v15  ;;  %466 = vmatpush.msrb.mxu0 %v444_v52  ;;  %v839_v15 = vld [vmem:[%s1303_s5 + $0x8] sm:$0xff] }
  0x35   :  { %382 = vmatpush.bf16.msra.mxu3 %v822_v61 }
  0x36   :  { %369 = vmatpush.bf16.msra.mxu2 %v814_v2 }
  0x3a   :  { %133 = vmatmul.f32.gmra.mxu0 %v97_v17  ;;  %v400_v17 = vld [vmem:[%s1307_s9 + $0x58] sm:$0xff] }
  0x3b   :  { %409 = vmatpush.msrb.mxu1 %v400_v17 }
  0xaf   :  { %v131_v19 = vpop.f32.mrf.mxu0 }
  0xb0   :  { %v137_v20 = vmul.f32 0.25, %v131_v19  ;;  %v399_v19 = vld [vmem:[%s1307_s9 + $0x50] sm:$0xff] }
  0xb1   :  { %410 = vmatpush.msrb.mxu1 %v399_v19  ;;  %v838_v19 = vld [vmem:[%s1303_s5] sm:$0xff] }
  0xb2   :  { %679 = vmatmul.msk.f32.vlgmr.msra.gmra.mxu1 %vm154_vm0, %v137_v20  ;;  %v139_v22 = vmul.f32 %v137_v20, %v137_v20 }
  0xb7   :  { %v134_v21 = vpop.f32.mrf.mxu0 }
  0xb8   :  { %v138_v23 = vmul.f32 0.25, %v134_v21  ;;  %v398_v21 = vld [vmem:[%s1307_s9 + $0x48] sm:$0xff] }
  0xb9   :  { %411 = vmatpush.msrb.mxu1 %v398_v21  ;;  %v831_v21 = vld [vmem:[%s1304_s6 + $0x8] sm:$0xff] }
  0xba   :  { %v140_v24 = vsub.f32 %v138_v23, %v139_v22  ;;  %v397_v22 = vld [vmem:[%s1307_s9 + $0x40] sm:$0xff]  ;;  %v396_v23 = vld [vmem:[%s1307_s9 + $0x38] sm:$0xff] }
  0xbb   :  { %412 = vmatpush.msrb.mxu1 %v397_v22 }
  0xbc   :  { %v141_v25 = vmax.f32 %v140_v24, 0.0  ;;  %v395_v24 = vld [vmem:[%s1307_s9 + $0x30] sm:$0xff] }
  0xbd   :  { %413 = vmatpush.msrb.mxu1 %v396_v23  ;;  %v476_v23 = vperm.slane %v1227_v45, 2 }
  0xbe   :  { %v142_v26 = vadd.f32 1e-06, %v141_v25 }
  0xbf   :  { %414 = vmatpush.msrb.mxu1 %v395_v24 }
  0xc0   :  { %851 = vrsqrt.f32 %v142_v26  ;;  %vm149_vm2 = vweird.f32 %v142_v26 }
  0xc1   :  { %853 = vpow2.f32 %v682_v36  ;;  %415 = vmatpush.msrb.mxu1 %v394_v37 }
  0xc3   :  { %416 = vmatpush.msrb.mxu1 %v393_v38 }
  0xc5   :  { %417 = vmatpush.msrb.mxu1 %v392_v39 }
  0xc6   :  { %v852_v27 = vpop.eup %851 }
  0xc7   :  { %v144_v28 = vmul.f32 %v852_v27, %v142_v26  ;;  %vm150_vm1 = vweird.f32 %v852_v27  ;;  %v854_v41 = vpop.eup %853 }
  0xc8   :  { %vm151_vm3 = vmor %vm149_vm2, %vm150_vm1  ;;  %v214_v44 = vadd.f32 1.0, %v854_v41  ;;  %v391_v41 = vld [vmem:[%s1307_s9 + $0x10] sm:$0xff] }
  0xc9   :  { %v145_v29 = vmul.f32 %v852_v27, %v144_v28  ;;  %418 = vmatpush.msrb.mxu1 %v391_v41 }
  0xca   :  { %855 = vrcp.f32 %v214_v44  ;;  %v226_v51 = vand.u32 2147483648, %v214_v44  ;;  %vm220_vm4 = vweird.f32 %v214_v44  ;;  %v224_v54 = vand.u32 2147483647, %v214_v44 }
  0xcb   :  { %v146_v30 = vmul.f32 0.5, %v145_v29  ;;  %419 = vmatpush.msrb.mxu1 %v390_v42 }
  0xcc   :  { %v227_v58 = vor.u32 1.1754944e-38, %v226_v51  ;;  %vm225_vm7 = vcmp.eq.f32.partialorder %v224_v54, 8.507059e+37 }
  0xcd   :  { %v147_v31 = vsub.f32 1.5, %v146_v30 }
  0xcf   :  { %v148_v32 = vmul.f32 %v852_v27, %v147_v31 }
  0xd0   :  { %v856_v48 = vpop.eup %855 }
  0xd1   :  { %v152_v33 = vsel %vm151_vm3, %v852_v27, %v148_v32  ;;  %v216_v50 = vmul.f32 %v856_v48, %v214_v44  ;;  %vm221_vm5 = vweird.f32 %v856_v48  ;;  %v389_v44 = vld [vmem:[%s1307_s9] sm:$0xff] }
  0xd2   :  { %680 = vmatmul.msk.f32.gmra.mxu1 %vm154_vm0, %v152_v33  ;;  %vm222_vm6 = vmor %vm220_vm4, %vm221_vm5 }
  0xd3   :  { %v217_v53 = vsub.f32 1.0, %v216_v50  ;;  %420 = vmatpush.msrb.mxu1 %v389_v44 }
  0xd5   :  { %v218_v56 = vmul.f32 %v856_v48, %v217_v53 }
  0xd7   :  { %v219_v60 = vadd.f32 %v856_v48, %v218_v56 }
  0xd9   :  { %v223_v62 = vsel %vm222_vm6, %v856_v48, %v219_v60 }
  0xda   :  { %v228_v0 = vsel %vm225_vm7, %v227_v58, %v223_v62 }
  0xdb   :  { %v230_v1 = vmul.f32 %v228_v0, %v210_v35 }
  0xdd   :  { %v232_v5 = vpack.c.bf16 %v230_v1, %v230_v1 }
  0xdf   :  { %383 = vmatmul.bf16.vlgmr.msra.gmra.mxu3 %v232_v5  ;;  %v844_v5 = vld [vmem:[%s1303_s5 + $0x30] sm:$0xff] }
 0x12f   :  { %v178_v57 = vpop.f32.mrf.mxu1 }
 0x130   :  { %v184_v3 = vsub.f32 %v1123_v16, %v178_v57 }
 0x14f   :  { %v181_v6 = vpop.f32.mrf.mxu1 }
 0x150   :  { %v185_v7 = vmul.f32 %v184_v3, %v181_v6  ;;  %v837_v6 = vld [vmem:[%s1304_s6 + $0x38] sm:$0xff] }
 0x151   :  { %566 = vmatpush.bf16.msrb.mxu2 %v837_v6 }
 0x152   :  { %v187_v9 = vmul.f32 %v186_v4, %v185_v7  ;;  %v845_v4 = vld [vmem:[%s1303_s5 + $0x38] sm:$0xff]  ;;  %v843_v7 = vld [vmem:[%s1303_s5 + $0x28] sm:$0xff] }
 0x153   :  { %645 = vmatpush.bf16.msrb.mxu3 %v845_v4 }
 0x154   :  { %v189_v10 = vadd.f32 %v188_v8, %v187_v9  ;;  %v836_v8 = vld [vmem:[%s1304_s6 + $0x30] sm:$0xff]  ;;  %v842_v9 = vld [vmem:[%s1303_s5 + $0x20] sm:$0xff] }
 0x155   :  { %567 = vmatpush.bf16.msrb.mxu2 %v836_v8 }
 0x156   :  { %v681_v11 = vmul.f32 -1.442695, %v189_v10 }
 0x157   :  { %646 = vmatpush.bf16.msrb.mxu3 %v844_v5 }
 0x158   :  { %857 = vpow2.f32 %v681_v11  ;;  %v841_v11 = vld [vmem:[%s1303_s5 + $0x18] sm:$0xff]  ;;  %s999_s5 = smov [#allocation10]  }
 0x15b   :  { %647 = vmatpush.bf16.msrb.mxu3 %v843_v7 }
 0x15e   :  { %v858_v18 = vpop.eup %857 }
 0x15f   :  { %v193_v20 = vadd.f32 1.0, %v858_v18  ;;  %648 = vmatpush.bf16.msrb.mxu3 %v842_v9  ;;  %v832_v18 = vld [vmem:[%s1304_s6 + $0x10] sm:$0xff] }
 0x161   :  { %859 = vrcp.f32 %v193_v20  ;;  %v205_v28 = vand.u32 2147483648, %v193_v20  ;;  %v203_v30 = vand.u32 2147483647, %v193_v20  ;;  %vm199_vm9 = vweird.f32 %v193_v20 }
 0x162   :  { %v384_v40 = vpop.f32.mrf.mxu3 }
 0x163   :  { %v206_v32 = vor.u32 1.1754944e-38, %v205_v28  ;;  %vm204_vm11 = vcmp.eq.f32.partialorder %v203_v30, 8.507059e+37  ;;  %649 = vmatpush.bf16.msrb.mxu3 %v841_v11 }
 0x167   :  { %v860_v25 = vpop.eup %859  ;;  %650 = vmatpush.bf16.msrb.mxu3 %v840_v13 }
 0x168   :  { %v195_v26 = vmul.f32 %v860_v25, %v193_v20  ;;  %vm200_vm8 = vweird.f32 %v860_v25  ;;  %v579_v20 = vpack.c.bf16 %v1123_v16, %v1123_v16  ;;  %v478_v16 = vperm.slane %v1227_v45, 3 }
 0x169   :  { %vm201_vm10 = vmor %vm199_vm9, %vm200_vm8 }
 0x16a   :  { %v196_v27 = vsub.f32 1.0, %v195_v26  ;;  %v386_v43 = vpop.f32.mrf.mxu3 }
 0x16b   :  { %651 = vmatpush.bf16.msrb.mxu3 %v839_v15 }
 0x16c   :  { %v197_v29 = vmul.f32 %v860_v25, %v196_v27 }
 0x16e   :  { %v198_v31 = vadd.f32 %v860_v25, %v197_v29 }
 0x16f   :  { %652 = vmatpush.bf16.msrb.mxu3 %v838_v19 }
 0x170   :  { %v202_v33 = vsel %vm201_vm10, %v860_v25, %v198_v31  ;;  %v830_v25 = vld [vmem:[%s1304_s6] sm:$0xff] }
 0x171   :  { %v207_v34 = vsel %vm204_vm11, %v206_v32, %v202_v33 }
 0x172   :  { %v209_v35 = vmul.f32 %v207_v34, %v189_v10  ;;  %v835_v10 = vld [vmem:[%s1304_s6 + $0x28] sm:$0xff]  ;;  %653 = vmatmul.bf16.vlgmr.msrb.gmra.mxu3 %v579_v20  ;;  %s665_s6 = sshll.u32 %s999_s5, 4  ;;  %s666_s6 = int_to_ptr.vmem [resolvable:$true] %s665_s6 }
 0x173   :  { %568 = vmatpush.bf16.msrb.mxu2 %v835_v10 }
 0x174   :  { %v231_v36 = vpack.c.bf16 %v209_v35, %v209_v35 }
 0x176   :  { %370 = vmatmul.bf16.vlgmr.msra.gmra.mxu2 %v231_v36 }
 0x177   :  { %569 = vmatpush.bf16.msrb.mxu2 %v834_v12 }
 0x17b   :  { %570 = vmatpush.bf16.msrb.mxu2 %v833_v14 }
 0x17f   :  { %571 = vmatpush.bf16.msrb.mxu2 %v832_v18 }
 0x183   :  { %572 = vmatpush.bf16.msrb.mxu2 %v831_v21 }
 0x187   :  { %573 = vmatpush.bf16.msrb.mxu2 %v830_v25 }
 0x1f5   :  { %v654_v44 = vpop.f32.mrf.mxu3 }
 0x1f9   :  { %v371_v47 = vpop.f32.mrf.mxu2 }
 0x1fa   :  { %v372_v48 = vadd.f32 %v371_v47, %v265_v46  ;;  %v596_v47 = vperm.slane %v1227_v45, 1 }
 0x1fc   :  { %v1230_v49 = vadd.f32 %v384_v40, %v372_v48  ;;  %v517_v48 = vperm.slane %v1227_v45, 4 }
 0x1fd   :  { %v656_v46 = vpop.f32.mrf.mxu3 }
 0x1fe   :  { %421 = vmatmul.f32.vlgmr.msrb.gmra.mxu1 %v1230_v49  ;;  %v388_v51 = vmul.f32 %v1230_v49, %v1230_v49 }
 0x201   :  { %v373_v50 = vpop.f32.mrf.mxu2 }
 0x206   :  { %424 = vmatmul.f32.gmra.mxu1 %v388_v51 }
 0x27b   :  { %v422_v53 = vpop.f32.mrf.mxu1 }
 0x27c   :  { %v428_v54 = vmul.f32 0.125, %v422_v53 }
 0x27e   :  { %747 = vmatmul.msk.f32.vlgmr.msrb.gmra.mxu0 %vm154_vm0, %v428_v54  ;;  %v430_v56 = vmul.f32 %v428_v54, %v428_v54 }
 0x283   :  { %v425_v55 = vpop.f32.mrf.mxu1 }
 0x284   :  { %v429_v57 = vmul.f32 0.125, %v425_v55 }
 0x286   :  { %v431_v58 = vsub.f32 %v429_v57, %v430_v56 }
 0x288   :  { %v432_v59 = vmax.f32 %v431_v58, 0.0 }
 0x28a   :  { %v433_v60 = vadd.f32 1e-06, %v432_v59 }
 0x28c   :  { %861 = vrsqrt.f32 %v433_v60  ;;  %vm440_vm13 = vweird.f32 %v433_v60 }
 0x292   :  { %v862_v61 = vpop.eup %861 }
 0x293   :  { %v435_v62 = vmul.f32 %v862_v61, %v433_v60  ;;  %vm441_vm12 = vweird.f32 %v862_v61 }
 0x294   :  { %vm442_vm14 = vmor %vm440_vm13, %vm441_vm12 }
 0x295   :  { %v436_v63 = vmul.f32 %v862_v61, %v435_v62 }
 0x297   :  { %v437_v0 = vmul.f32 0.5, %v436_v63 }
 0x299   :  { %v438_v1 = vsub.f32 1.5, %v437_v0 }
 0x29b   :  { %v439_v2 = vmul.f32 %v862_v61, %v438_v1 }
 0x29d   :  { %v443_v3 = vsel %vm442_vm14, %v862_v61, %v439_v2 }
 0x29e   :  { %748 = vmatmul.msk.f32.gmra.mxu0 %vm154_vm0, %v443_v3 }
 0x2fb   :  { %v468_v17 = vpop.f32.mrf.mxu0 }
 0x2fc   :  { %v474_v22 = vsub.f32 %v1230_v49, %v468_v17  ;;  %v655_v49 = vadd.f32 %v654_v44, %v596_v47 }
 0x31b   :  { %v471_v24 = vpop.f32.mrf.mxu0 }
 0x31c   :  { %v475_v26 = vmul.f32 %v474_v22, %v471_v24 }
 0x31e   :  { %v477_v27 = vmul.f32 %v476_v23, %v475_v26 }
 0x320   :  { %v479_v28 = vadd.f32 %v478_v16, %v477_v27 }
 0x322   :  { %v749_v29 = vmul.f32 -1.442695, %v479_v28 }
 0x324   :  { %863 = vpow2.f32 %v749_v29 }
 0x32a   :  { %v864_v30 = vpop.eup %863 }
 0x32b   :  { %v483_v31 = vadd.f32 1.0, %v864_v30 }
 0x32d   :  { %865 = vrcp.f32 %v483_v31  ;;  %v495_v35 = vand.u32 2147483648, %v483_v31  ;;  %v493_v37 = vand.u32 2147483647, %v483_v31  ;;  %vm489_vm0 = vweird.f32 %v483_v31 }
 0x32f   :  { %v496_v39 = vor.u32 1.1754944e-38, %v495_v35  ;;  %vm494_vm2 = vcmp.eq.f32.partialorder %v493_v37, 8.507059e+37 }
 0x333   :  { %v866_v32 = vpop.eup %865 }
 0x334   :  { %v485_v33 = vmul.f32 %v866_v32, %v483_v31  ;;  %vm490_vm15 = vweird.f32 %v866_v32 }
 0x335   :  { %vm491_vm1 = vmor %vm489_vm0, %vm490_vm15 }
 0x336   :  { %v486_v34 = vsub.f32 1.0, %v485_v33 }
 0x338   :  { %v487_v36 = vmul.f32 %v866_v32, %v486_v34 }
 0x33a   :  { %v488_v38 = vadd.f32 %v866_v32, %v487_v36 }
 0x33c   :  { %v492_v40 = vsel %vm491_vm1, %v866_v32, %v488_v38 }
 0x33d   :  { %v497_v41 = vsel %vm494_vm2, %v496_v39, %v492_v40 }
 0x33e   :  { %v499_v42 = vmul.f32 %v497_v41, %v479_v28 }
 0x340   :  { %v500_v43 = vpack.c.bf16 %v499_v42, %v499_v42 }
 0x342   :  { %574 = vmatmul.bf16.vlgmr.msrb.gmra.mxu2 %v500_v43 }
 0x3c5   :  { %v575_v50 = vpop.f32.mrf.mxu2 }
 0x3c6   :  { %v576_v51 = vadd.f32 %v575_v50, %v517_v48 }
 0x3c8   :  { %v658_v52 = vadd.f32 %v655_v49, %v576_v51 }
 0x3ca   :  { %659 = vst [vmem:[#allocation10] sm:$0xff] %v658_v52 }
 0x3cb   :  { %670 = dma.vmem_to_hbm [thread:$0]  %s666_s6, 128, %s668_s18, [#allocation4]  }
 0x3cd   :  { %v577_v53 = vpop.f32.mrf.mxu2 }
 0x3ce   :  { %993 = dma.done.wait [#allocation4], 128  }
 0x3cf   :  { %994 = vsyncadd [#allocation4], 4294967168 }
 0x3d0   :  { %675 = vsyncpa [#allocation3], 1 }
 0x3d1   :  { %676 = vsyncpa [#allocation6], 1 }
 0x3d2   :  { %677 = vsyncpa [#allocation9], 1 }
 0x3d3   :  { %678 = vsyncpa [#allocation4], 1 }

</bundles_post_ra>
